<compile_context>
chip_gen: v7x
topology: tpu7x:2x2x1
jax: 0.10.0
libtpu: 0.0.40
codegen_flags: <defaults>
</compile_context>

<pallas_src>
import jax
import jax.numpy as jnp
from jax import lax
from jax.experimental import pallas as pl
from jax.experimental.pallas import tpu as pltpu


def _round_up(a, m):
    return ((a + m - 1) // m) * m


def _make_kernel(M, num_experts):
    """Kernel closure over static sizes. M = d_r * d_e."""

    def kernel(x_ref, y_ref, w_ref, b_ref, dm_ref, it_ref, out_ref):
        # Fused projection: [x | y] @ blockdiag(WQ, WR) + [bQ | bR]
        #   first M lanes : qtile[b, j*d_e+k] = q_rel[b, k]
        #   last  M lanes : trep [b, j*d_e+k] = t[b, j]
        xy = jnp.concatenate([x_ref[...], y_ref[...]], axis=-1)            # (TB, 2*in) bf16
        qt = jnp.dot(xy, w_ref[...],
                     preferred_element_type=jnp.float32) + b_ref[...]      # (TB, 2*M) f32

        # Bilinear term P[b, j*d_e+k] = t[b, j] * q_rel[b, k]  (one VPU multiply).
        p = qt[:, :M] * qt[:, M:]                                          # (TB, M) f32

        # logits[b, n] = sum_{j,k} P[b, j*d_e+k] * DM2[j*d_e+k, n]   (lane-dense MXU)
        logits = jnp.dot(p.astype(jnp.bfloat16), dm_ref[...],
                         preferred_element_type=jnp.float32)               # (TB, N_pad) f32

        # Temperature applied in f32 on the logits (not folded into bf16 weights).
        logits = logits * it_ref[0, 0]

        # Mask padded expert lanes so they carry no probability mass.
        lane = lax.broadcasted_iota(jnp.int32, logits.shape, 1)
        logits = jnp.where(lane < num_experts, logits, -1e30)

        # Numerically stable softmax; divide on the EUP.
        # NOTE: approx reciprocal -> rows sum to 1 only to ~1e-3 (fine for routing).
        m = jnp.max(logits, axis=-1, keepdims=True)
        e = jnp.exp(logits - m)
        denom = jnp.sum(e, axis=-1, keepdims=True)
        out_ref[...] = (e * pl.reciprocal(denom, approx=True)).astype(out_ref.dtype)

    return kernel


def tucker_routing(x, y, params, *, block_rows=128):
    """TuckerRouting forward.

    block_rows: max batch tile. On v5e/v6e (128 MiB VMEM) 256-512 is profitable
    for large B; on v7x keep <= 128 unless the 64 MiB budget has been re-checked.
    """
    B, input_dim = x.shape
    d_e = params["proj_rel_w"].shape[0]
    d_r = params["proj_graph_w"].shape[0]
    num_experts = params["entity_emb"].shape[0]
    M = d_r * d_e
    N_pad = _round_up(num_experts, 128)
    f32, bf16 = jnp.float32, jnp.bfloat16

    # ---------------- trace-time algebraic folding (tiny weights, plain JAX) ----------------
    W_rel = params["proj_rel_w"].T.astype(f32)                     # (in, d_e)
    b_rel = params["proj_rel_b"].astype(f32)                       # (d_e,)
    R = params["relation_emb"].astype(f32)
    W_t = params["proj_graph_w"].T.astype(f32) @ R                 # (in, d_r): t = y @ W_t + b_t
    b_t = params["proj_graph_b"].astype(f32) @ R                   # (d_r,)

    # Fold the (j,k)-lane-grid expansion into the projection weights:
    #   qtile[b, j*d_e+k] = q_rel[b,k] -> WQ = tile(W_rel, d_r),  bQ = tile(b_rel, d_r)
    #   trep [b, j*d_e+k] = t[b,j]     -> WR = repeat(W_t, d_e),  bR = repeat(b_t, d_e)
    WQ = jnp.tile(W_rel, (1, d_r))                                  # (in, M)
    bQ = jnp.tile(b_rel, (d_r,))                                    # (M,)
    WR = jnp.repeat(W_t, d_e, axis=1)                               # (in, M)
    bR = jnp.repeat(b_t, d_e)                                       # (M,)

    # Single block-diagonal weight for the fused [x | y] projection matmul.
    zeros = jnp.zeros((input_dim, M), f32)
    W_big = jnp.concatenate(
        [jnp.concatenate([WQ, zeros], axis=1),
         jnp.concatenate([zeros, WR], axis=1)], axis=0)             # (2*in, 2*M)
    b_big = jnp.concatenate([bQ, bR]).reshape(1, 2 * M)             # (1, 2*M) f32

    # DM2[j*d_e+k, n] = sum_i E[n, i] * core[i, j, k]   (pure fold, NO temperature).
    D = jnp.einsum("ni,ijk->njk", params["entity_emb"].astype(f32),
                   params["core_tensor"].astype(f32))               # (N, d_r, d_e)
    DM2 = jnp.transpose(D, (1, 2, 0)).reshape(M, num_experts)       # (M, N)
    DM2 = jnp.pad(DM2, ((0, 0), (0, N_pad - num_experts)))          # zero cols -> masked lanes

    inv_temp = (1.0 / params["temperature"].astype(f32)).reshape(1, 1)   # f32 SMEM scalar

    # bf16 MXU operands; biases / temperature stay f32.
    x_b, y_b = x.astype(bf16), y.astype(bf16)
    W_big_b, DM2_b = W_big.astype(bf16), DM2.astype(bf16)

    # ---------------- batch tiling ----------------
    # TB: multiple of 16 (bf16 sublane packing), divides round_up(B,16) (<=15 padded
    # rows), and yields >= 2 grid steps when possible (v7x has 2 TensorCores sharding
    # the "parallel" axis).
    B16 = _round_up(max(B, 1), 16)
    cap = min(block_rows, B16 if B16 < 32 else B16 // 2)
    cap = max(16, (cap // 16) * 16)
    TB = 16
    for cand in range(16, cap + 1, 16):
        if B16 % cand == 0:
            TB = cand
    if B16 != B:
        pad = ((0, B16 - B), (0, 0))
        x_b = jnp.pad(x_b, pad)
        y_b = jnp.pad(y_b, pad)
    grid = (B16 // TB,)

    rows = lambda i: (i, 0)    # batch-tiled operands
    fixed = lambda i: (0, 0)   # weights: same block every grid step

    # TODO(synk): at production sizes mark the constant-index weight operands with
    # pipeline_mode=pl.Buffered(1) (single buffer) and, if DM2 outgrows a few MiB,
    # add an expert-axis grid dimension that tiles DM2 / N_pad (online or 2-pass softmax).
    in_specs = [
        pl.BlockSpec((TB, input_dim), rows),                  # x      (bf16)
        pl.BlockSpec((TB, input_dim), rows),                  # y      (bf16)
        pl.BlockSpec((2 * input_dim, 2 * M), fixed),          # W_big  (bf16)
        pl.BlockSpec((1, 2 * M), fixed),                      # b_big  (f32)
        pl.BlockSpec((M, N_pad), fixed),                      # DM2    (bf16)
        pl.BlockSpec(memory_space=pltpu.MemorySpace.SMEM),    # 1/temperature (f32 scalar)
    ]
    out_specs = pl.BlockSpec((TB, N_pad), rows)               # lane-dense (N_pad % 128 == 0)

    # VMEM budget: batch-tiled blocks and the output are double-buffered; weights are
    # fetched once but budgeted 2x for headroom. Cap at 48 MiB (v7x has 64 MiB/TC).
    def _nbytes(shape, dt):
        n = 1
        for s in shape:
            n *= s
        return n * jnp.dtype(dt).itemsize

    per_step = (2 * 2 * _nbytes((TB, input_dim), bf16)
                + 2 * _nbytes((2 * input_dim, 2 * M), bf16)
                + 2 * _nbytes((1, 2 * M), f32)
                + 2 * _nbytes((M, N_pad), bf16)
                + 2 * _nbytes((TB, N_pad), f32))
    vmem_limit = int(min(48 * 2**20, max(32 * 2**20, 2 * per_step)))

    out = pl.pallas_call(
        _make_kernel(M, num_experts),
        out_shape=jax.ShapeDtypeStruct((B16, N_pad), jnp.float32),
        grid=grid,
        in_specs=in_specs,
        out_specs=out_specs,
        compiler_params=pltpu.CompilerParams(
            dimension_semantics=("parallel",),
            vmem_limit_bytes=vmem_limit,
        ),
    )(x_b, y_b, W_big_b, b_big, DM2_b, inv_temp)
    return out[:B, :num_experts]


def tucker_routing_reference(x, y, p):
    """Pure-JAX f32 reference mirroring the PyTorch forward exactly."""
    q_rel = x @ p["proj_rel_w"].T + p["proj_rel_b"]
    q_graph = y @ p["proj_graph_w"].T + p["proj_graph_b"]
    t = jnp.einsum("bi,ij->bj", q_graph, p["relation_emb"])
    interaction = jnp.einsum("ijk,bj->bik", p["core_tensor"], t)
    wr_es = jnp.einsum("bik,bk->bi", interaction, q_rel)
    scores = jnp.einsum("bd,nd->bn", wr_es, p["entity_emb"]) / p["temperature"][0]
    return jax.nn.softmax(scores, axis=-1)


def init_params(key, input_dim, num_experts, d_e, d_r):
    ks = jax.random.split(key, 6)
    return {
        # kaiming_normal_(fan_in = d_e)
        "entity_emb": jax.random.normal(ks[0], (num_experts, d_e), jnp.float32)
        * jnp.sqrt(2.0 / d_e),
        # kaiming_normal_(fan_in = d_r)
        "relation_emb": jax.random.normal(ks[1], (d_r, d_r), jnp.float32)
        * jnp.sqrt(2.0 / d_r),
        # normal(0, 0.01)
        "core_tensor": jax.random.normal(ks[2], (d_e, d_r, d_e), jnp.float32) * 0.01,
        # xavier_normal_
        "proj_rel_w": jax.random.normal(ks[3], (d_e, input_dim), jnp.float32)
        * jnp.sqrt(2.0 / (input_dim + d_e)),
        "proj_rel_b": jnp.zeros((d_e,), jnp.float32),
        "proj_graph_w": jax.random.normal(ks[4], (d_r, input_dim), jnp.float32)
        * jnp.sqrt(2.0 / (input_dim + d_r)),
        "proj_graph_b": jnp.zeros((d_r,), jnp.float32),
        "temperature": jnp.array([1.0], jnp.float32),
    }


if __name__ == "__main__":
    B, input_dim, num_experts, d_e, d_r = 8, 32, 8, 16, 16

    key = jax.random.PRNGKey(0)
    kx, ky, kp = jax.random.split(key, 3)
    x = jax.random.normal(kx, (B, input_dim), jnp.float32)
    y = jax.random.normal(ky, (B, input_dim), jnp.float32)
    params = init_params(kp, input_dim, num_experts, d_e, d_r)

    probs = jax.block_until_ready(tucker_routing(x, y, params))

    ref = tucker_routing_reference(x, y, params)
    assert probs.shape == (B, num_experts)
    # bf16 MXU operands + approx reciprocal -> looser tolerance than pure f32.
    assert jnp.allclose(probs, ref, atol=2e-2, rtol=0.0), (
        f"mismatch: max err {jnp.max(jnp.abs(probs - ref))}"
    )
    assert jnp.allclose(jnp.sum(probs, axis=-1), 1.0, atol=5e-3)

    print("KERNEL_OK")
</pallas_src>

<mosaic_0001>
module attributes {stable_mosaic.version = 11 : i64} {
  func.func @kernel(%arg0: i32, %arg1: memref<16x32xbf16, #tpu.memory_space<vmem>>, %arg2: memref<16x32xbf16, #tpu.memory_space<vmem>>, %arg3: memref<64x512xbf16, #tpu.memory_space<vmem>>, %arg4: memref<1x512xf32, #tpu.memory_space<vmem>>, %arg5: memref<256x128xbf16, #tpu.memory_space<vmem>>, %arg6: memref<1x1xf32, #tpu.memory_space<smem>>, %arg7: memref<16x128xf32, #tpu.memory_space<vmem>>) attributes {dimension_semantics = [#tpu.dimension_semantics<parallel>], iteration_bounds = array<i64: 1>, scalar_prefetch = 0 : i64, scratch_operands = 0 : i64, tpu.core_type = #tpu.core_type<tc>, window_params = [{transform_indices = @transform_0, window_bounds = array<i64: 16, 32>}, {transform_indices = @transform_1, window_bounds = array<i64: 16, 32>}, {pipeline_mode = #tpu.pipeline_mode<synchronous>, transform_indices = @transform_2, window_bounds = array<i64: 64, 512>}, {pipeline_mode = #tpu.pipeline_mode<synchronous>, transform_indices = @transform_3, window_bounds = array<i64: 1, 512>}, {pipeline_mode = #tpu.pipeline_mode<synchronous>, transform_indices = @transform_4, window_bounds = array<i64: 256, 128>}, {transform_indices = @transform_5, window_bounds = array<i64: 1, 1>}, {transform_indices = @transform_6, window_bounds = array<i64: 16, 128>}]} {
    %c0 = arith.constant 0 : index
    %c0_0 = arith.constant 0 : index
    %0 = vector.load %arg1[%c0, %c0_0] : memref<16x32xbf16, #tpu.memory_space<vmem>>, vector<16x32xbf16>
    %c0_1 = arith.constant 0 : index
    %c0_2 = arith.constant 0 : index
    %1 = vector.load %arg2[%c0_1, %c0_2] : memref<16x32xbf16, #tpu.memory_space<vmem>>, vector<16x32xbf16>
    %2 = tpu.concatenate %0, %1 in 1 : vector<16x32xbf16>, vector<16x32xbf16> -> vector<16x64xbf16>
    %c0_3 = arith.constant 0 : index
    %c0_4 = arith.constant 0 : index
    %3 = vector.load %arg3[%c0_3, %c0_4] : memref<64x512xbf16, #tpu.memory_space<vmem>>, vector<64x512xbf16>
    %cst = arith.constant dense<0.000000e+00> : vector<16x512xf32>
    %4 = tpu.matmul %2, %3, %cst {dimension_numbers = #tpu.dot_dimension_numbers<[1], [0], [0], [1], [0, 0, 1, 1], [], []>} : vector<16x64xbf16>, vector<64x512xbf16>, vector<16x512xf32> -> vector<16x512xf32>
    %c0_5 = arith.constant 0 : index
    %c0_6 = arith.constant 0 : index
    %5 = vector.load %arg4[%c0_5, %c0_6] : memref<1x512xf32, #tpu.memory_space<vmem>>, vector<1x512xf32>
    %6 = vector.broadcast %5 : vector<1x512xf32> to vector<16x512xf32>
    %7 = arith.addf %4, %6 : vector<16x512xf32>
    %8 = vector.extract_strided_slice %7 {offsets = [0, 0], sizes = [16, 256], strides = [1, 1]} : vector<16x512xf32> to vector<16x256xf32>
    %9 = vector.extract_strided_slice %7 {offsets = [0, 256], sizes = [16, 256], strides = [1, 1]} : vector<16x512xf32> to vector<16x256xf32>
    %10 = arith.mulf %8, %9 : vector<16x256xf32>
    %11 = arith.truncf %10 : vector<16x256xf32> to vector<16x256xbf16>
    %c0_7 = arith.constant 0 : index
    %c0_8 = arith.constant 0 : index
    %12 = vector.load %arg5[%c0_7, %c0_8] : memref<256x128xbf16, #tpu.memory_space<vmem>>, vector<256x128xbf16>
    %cst_9 = arith.constant dense<0.000000e+00> : vector<16x128xf32>
    %13 = tpu.matmul %11, %12, %cst_9 {dimension_numbers = #tpu.dot_dimension_numbers<[1], [0], [0], [1], [0, 0, 1, 1], [], []>} : vector<16x256xbf16>, vector<256x128xbf16>, vector<16x128xf32> -> vector<16x128xf32>
    %c0_10 = arith.constant 0 : index
    %c0_11 = arith.constant 0 : index
    %14 = memref.load %arg6[%c0_10, %c0_11] : memref<1x1xf32, #tpu.memory_space<smem>>
    %15 = vector.broadcast %14 : f32 to vector<16x128xf32>
    %16 = arith.mulf %13, %15 : vector<16x128xf32>
    %17 = tpu.iota {dimensions = array<i32: 1>} : vector<16x128xi32>
    %c8_i32 = arith.constant 8 : i32
    %18 = vector.broadcast %c8_i32 : i32 to vector<16x128xi32>
    %19 = arith.cmpi slt, %17, %18 : vector<16x128xi32>
    %cst_12 = arith.constant -1.000000e+30 : f32
    %20 = vector.broadcast %cst_12 : f32 to vector<16x128xf32>
    %21 = arith.select %19, %16, %20 : vector<16x128xi1>, vector<16x128xf32>
    %cst_13 = arith.constant dense<0xFF800000> : vector<16xf32>
    %22 = vector.multi_reduction <maximumf>, %21, %cst_13 [1] : vector<16x128xf32> to vector<16xf32>
    %23 = vector.shape_cast %22 : vector<16xf32> to vector<16x1xf32>
    %24 = vector.broadcast %23 : vector<16x1xf32> to vector<16x128xf32>
    %25 = arith.subf %21, %24 : vector<16x128xf32>
    %26 = math.exp %25 : vector<16x128xf32>
    %cst_14 = arith.constant dense<0.000000e+00> : vector<16xf32>
    %27 = vector.multi_reduction <add>, %26, %cst_14 [1] : vector<16x128xf32> to vector<16xf32>
    %28 = vector.shape_cast %27 : vector<16xf32> to vector<16x1xf32>
    %29 = tpu.reciprocal %28 {approx = true} : vector<16x1xf32> -> vector<16x1xf32>
    %30 = vector.broadcast %29 : vector<16x1xf32> to vector<16x128xf32>
    %31 = arith.mulf %26, %30 : vector<16x128xf32>
    %c0_15 = arith.constant 0 : index
    %c0_16 = arith.constant 0 : index
    %32 = vector.load %arg7[%c0_15, %c0_16] : memref<16x128xf32, #tpu.memory_space<vmem>>, vector<16x128xf32>
    tpu.vector_store %arg7[%c0_15, %c0_16], %31 {strides = array<i32>} : memref<16x128xf32, #tpu.memory_space<vmem>>, vector<16x128xf32>,
    return
  }
  func.func @transform_0(%arg0: i32) -> (i32, i32) {
    %c0_i32 = arith.constant 0 : i32
    %c0_i32_0 = arith.constant 0 : i32
    return %arg0, %c0_i32 : i32, i32
  }
  func.func @transform_1(%arg0: i32) -> (i32, i32) {
    %c0_i32 = arith.constant 0 : i32
    %c0_i32_0 = arith.constant 0 : i32
    return %arg0, %c0_i32 : i32, i32
  }
  func.func @transform_2(%arg0: i32) -> (i32, i32) {
    %c0_i32 = arith.constant 0 : i32
    %c0_i32_0 = arith.constant 0 : i32
    %c0_i32_1 = arith.constant 0 : i32
    return %c0_i32, %c0_i32_0 : i32, i32
  }
  func.func @transform_3(%arg0: i32) -> (i32, i32) {
    %c0_i32 = arith.constant 0 : i32
    %c0_i32_0 = arith.constant 0 : i32
    %c0_i32_1 = arith.constant 0 : i32
    return %c0_i32, %c0_i32_0 : i32, i32
  }
  func.func @transform_4(%arg0: i32) -> (i32, i32) {
    %c0_i32 = arith.constant 0 : i32
    %c0_i32_0 = arith.constant 0 : i32
    %c0_i32_1 = arith.constant 0 : i32
    return %c0_i32, %c0_i32_0 : i32, i32
  }
  func.func @transform_5(%arg0: i32) -> (i32, i32) {
    %c0_i32 = arith.constant 0 : i32
    %c0_i32_0 = arith.constant 0 : i32
    %c0_i32_1 = arith.constant 0 : i32
    return %c0_i32, %c0_i32_0 : i32, i32
  }
  func.func @transform_6(%arg0: i32) -> (i32, i32) {
    %c0_i32 = arith.constant 0 : i32
    %c0_i32_0 = arith.constant 0 : i32
    return %arg0, %c0_i32 : i32, i32
  }
}

</mosaic_0001>

<bundles_post_ra>
// kernel: tpu_custom_call.1
= control target key start
LH: loop header
LB: loop body
LE: loop exit
PB: predicated region body
PF: predicated region fallthrough
CT: control target
= control target key end

     0   :  { %12 = vsyncpa [#allocation4], 0  ;;  %s902_s0 = inlined_call_operand.hbm [shape: bf16[16,32], index: 0, kind: input, shape index: {}]   ;;  %s903_s1 = inlined_call_operand.hbm [shape: bf16[16,32], index: 1, kind: input, shape index: {}]   ;;  %s904_s2 = inlined_call_operand.hbm [shape: bf16[64,512], index: 2, kind: input, shape index: {}]   ;;  %s905_s3 = inlined_call_operand.vmem [shape: f32[1,512], index: 3, kind: input, shape index: {}]   ;;  %s906_s4 = inlined_call_operand.hbm [shape: bf16[256,128], index: 4, kind: input, shape index: {}]   ;;  %s907_s5 = inlined_call_operand.<no memory space> [shape: f32[1,1], index: 5, kind: input, shape index: {}]   ;;  %s908_s6 = inlined_call_operand.hbm [shape: f32[16,128], index: 6, kind: output, shape index: {}]  }
   0x1   :  { %13 = vsyncpa [#allocation7], 0 }
   0x2   :  { %14 = vsyncpa [#allocation10], 0 }
   0x3   :  { %15 = vsyncpa [#allocation5], 0  ;;  %s770_s21 = smov [#allocation6]   ;;  %s771_s23 = smov [#allocation3]  }
   0x4   :  { %s33_s22 = sshll.u32 %s770_s21, 4  ;;  %s21_s24 = sshll.u32 %s771_s23, 4  ;;  %s34_s22 = int_to_ptr.vmem [resolvable:$true] %s33_s22  ;;  %s818_s24 = int_to_ptr.vmem [resolvable:$true] %s21_s24 }
   0x5   :  { %s652_s27 = scalar_lea.hbm %s903_s1, 128 }
   0x6   :  { %p653_p0 = scmp.ne.s32.totalorder %s903_s1, %s652_s27  ;;  %p656_p1 = scmp.lt.u32.totalorder %s652_s27, %s903_s1 }
   0x8   :  { %p658_p2 = pnand %p656_p1, %p653_p0 }
   0xa   :  { %661 = shalt.err (!%p658_p2)
}
   0xb   :  { %s662_s8 = scalar_lea.vmem %s34_s22, 128  ;;  %p667_p4 = scmp.lt.s32.totalorder %s34_s22, %s34_s22 }
   0xc   :  { %p663_p3 = scmp.ne.s32.totalorder %s34_s22, %s662_s8  ;;  %p668_p5 = scmp.lt.s32.totalorder %s662_s8, %s662_s8 }
   0xe   :  { %p669_p6 = por %p668_p5, %p667_p4 }
  0x10   :  { %p670_p7 = pnand %p669_p6, %p663_p3 }
  0x12   :  { %673 = shalt.err (!%p670_p7)
}
  0x13   :  { %s772_s9 = smov 64   ;;  %s773_s10 = smov 4  }
  0x14   :  { %39 = dma.hbm_to_vmem [thread:$0]  %s903_s1, 128, %s34_s22, [#allocation7], %s772_s9, %s772_s9, %s773_s10  }
  0x15   :  { %s674_s15 = scalar_lea.hbm %s902_s0, 128 }
  0x16   :  { %p675_p8 = scmp.ne.s32.totalorder %s902_s0, %s674_s15  ;;  %p678_p9 = scmp.lt.u32.totalorder %s674_s15, %s902_s0 }
  0x18   :  { %p680_p10 = pnand %p678_p9, %p675_p8 }
  0x1a   :  { %683 = shalt.err (!%p680_p10)
}
  0x1b   :  { %s684_s20 = scalar_lea.vmem %s818_s24, 128  ;;  %p689_p12 = scmp.lt.s32.totalorder %s818_s24, %s818_s24 }
  0x1c   :  { %p685_p11 = scmp.ne.s32.totalorder %s818_s24, %s684_s20  ;;  %p690_p13 = scmp.lt.s32.totalorder %s684_s20, %s684_s20 }
  0x1e   :  { %p691_p0 = por %p690_p13, %p689_p12 }
  0x20   :  { %p692_p1 = pnand %p691_p0, %p685_p11 }
  0x22   :  { %695 = shalt.err (!%p692_p1)
}
  0x23   :  { %27 = dma.hbm_to_vmem [thread:$0]  %s902_s0, 128, %s818_s24, [#allocation4], %s772_s9, %s772_s9, %s773_s10  }
  0x24   :  { %s774_s22 = smov [#allocation8]   ;;  %s696_s27 = scalar_lea.hbm %s904_s2, 2048 }
  0x25   :  { %s45_s23 = sshll.u32 %s774_s22, 4  ;;  %p697_p2 = scmp.ne.s32.totalorder %s904_s2, %s696_s27  ;;  %s46_s23 = int_to_ptr.vmem [resolvable:$true] %s45_s23 }
  0x26   :  { %p700_p3 = scmp.lt.u32.totalorder %s696_s27, %s904_s2 }
  0x28   :  { %p702_p4 = pnand %p700_p3, %p697_p2 }
  0x2a   :  { %705 = shalt.err (!%p702_p4)
}
  0x2b   :  { %s706_s8 = scalar_lea.vmem %s46_s23, 2048  ;;  %p711_p6 = scmp.lt.s32.totalorder %s46_s23, %s46_s23 }
  0x2c   :  { %p707_p5 = scmp.ne.s32.totalorder %s46_s23, %s706_s8  ;;  %p712_p7 = scmp.lt.s32.totalorder %s706_s8, %s706_s8 }
  0x2e   :  { %p713_p8 = por %p712_p7, %p711_p6 }
  0x30   :  { %p714_p9 = pnand %p713_p8, %p707_p5 }
  0x32   :  { %717 = shalt.err (!%p714_p9)
}
  0x33   :  { %s775_s0 = smov 256   ;;  %s776_s24 = smov 16  }
  0x34   :  { %51 = dma.hbm_to_vmem [thread:$0]  %s904_s2, 2048, %s46_s23, [#allocation7], %s775_s0, %s775_s0, %s776_s24  }
  0x35   :  { %s777_s13 = smov [#allocation9]   ;;  %s718_s17 = scalar_lea.hbm %s906_s4, 2048 }
  0x36   :  { %s59_s14 = sshll.u32 %s777_s13, 4  ;;  %p719_p10 = scmp.ne.s32.totalorder %s906_s4, %s718_s17  ;;  %s60_s14 = int_to_ptr.vmem [resolvable:$true] %s59_s14 }
  0x37   :  { %p722_p11 = scmp.lt.u32.totalorder %s718_s17, %s906_s4 }
  0x39   :  { %p724_p12 = pnand %p722_p11, %p719_p10 }
  0x3b   :  { %727 = shalt.err (!%p724_p12)
}
  0x3c   :  { %s728_s21 = scalar_lea.vmem %s60_s14, 2048  ;;  %p733_p0 = scmp.lt.s32.totalorder %s60_s14, %s60_s14 }
  0x3d   :  { %p729_p13 = scmp.ne.s32.totalorder %s60_s14, %s728_s21  ;;  %p734_p1 = scmp.lt.s32.totalorder %s728_s21, %s728_s21 }
  0x3f   :  { %p735_p2 = por %p734_p1, %p733_p0 }
  0x41   :  { %p736_p3 = pnand %p735_p2, %p729_p13 }
  0x43   :  { %739 = shalt.err (!%p736_p3)
}
  0x44   :  { %65 = dma.hbm_to_vmem [thread:$0]  %s906_s4, 2048, %s60_s14, [#allocation10], %s772_s9, %s772_s9, %s773_s10  }
  0x45   :  { %762 = dma.done.wait [#allocation4], 128  }
  0x46   :  { %763 = vsyncadd [#allocation4], 4294967168 }
  0x47   :  { %764 = dma.done.wait [#allocation7], 2176  }
  0x48   :  { %765 = vsyncadd [#allocation7], 4294965120 }
  0x49   :  { %766 = dma.done.wait [#allocation10], 2048  }
  0x4a   :  { %767 = vsyncadd [#allocation10], 4294965248  ;;  %v778_v0 = vmov 0   ;;  %v602_v1 = vld [vmem:[#allocation6] sm:$0xff]   ;;  %v603_v2 = vld [vmem:[#allocation8 + $0x4] ss:$16 sps:$4 sm:$0xff]   ;;  %v119_v38 = vlaneseq }
  0x4b   :  { %254 = vmatprep.mubr.bf16.mxu1 %v778_v0  ;;  %s779_s23 = smov 32   ;;  %v605_v3 = vld [vmem:[#allocation8] ss:$16 sps:$4 sm:$0xff]   ;;  %222 = vmatprep.subr.bf16.mxu1 %v603_v2  ;;  %v606_v4 = vld [vmem:[#allocation8 + $0x24] ss:$16 sps:$4 sm:$0xff]   ;;  %v630_v13 = vld [vmem:[#allocation9 + $0x48] sm:$0xff]  }
  0x4c   :  { %95 = vrot.lane.b32.xlu0 %v602_v1, %s779_s23  ;;  %223 = vmatpush1.bf16.msra.mxu1 %v605_v3  ;;  %v608_v5 = vld [vmem:[#allocation8 + $0x20] ss:$16 sps:$4 sm:$0xff]   ;;  %v609_v6 = vld [vmem:[#allocation8 + $0x44] ss:$16 sps:$4 sm:$0xff]   ;;  %v618_v10 = vld [vmem:[#allocation8 + $0xc] ss:$16 sps:$4 sm:$0xff]  }
  0x4d   :  { %224 = vmatprep.subr.bf16.mxu1 %v606_v4  ;;  %v611_v7 = vld [vmem:[#allocation8 + $0x40] ss:$16 sps:$4 sm:$0xff]   ;;  %v612_v8 = vld [vmem:[#allocation8 + $0x64] ss:$16 sps:$4 sm:$0xff]   ;;  %v631_v14 = vld [vmem:[#allocation9 + $0x8] sm:$0xff]   ;;  %vm97_vm0 = vcmask 261120  }
  0x4e   :  { %v614_v9 = vld [vmem:[#allocation8 + $0x60] ss:$16 sps:$4 sm:$0xff]   ;;  %v616_v16 = vld [vmem:[#allocation8 + $0x8] ss:$16 sps:$4 sm:$0xff]   ;;  %vm219_vm1 = vcmask 523264   ;;  %v120_v42 = vshrl.u32 %v119_v38, 7 }
  0x4f   :  { %v628_v11 = vld [vmem:[#allocation9 + $0x40] sm:$0xff]   ;;  %v615_v15 = vld [vmem:[#allocation3] sm:$0xff]   ;;  %v621_v18 = vld [vmem:[#allocation8 + $0x2c] ss:$16 sps:$4 sm:$0xff]  }
  0x50   :  { %225 = vmatpush1.bf16.msra.mxu1 %v608_v5  ;;  %v629_v12 = vld [vmem:[#allocation9] sm:$0xff]   ;;  %567 = vmatprep.subr.bf16.mxu0 %v628_v11  ;;  %v619_v20 = vld [vmem:[#allocation8 + $0x28] ss:$16 sps:$4 sm:$0xff]   ;;  %v624_v21 = vld [vmem:[#allocation8 + $0x4c] ss:$16 sps:$4 sm:$0xff]   ;;  %v121_v43 = vsub.s32 0, %v120_v42 }
  0x51   :  { %226 = vmatprep.subr.bf16.mxu1 %v609_v6  ;;  %568 = vmatpush3.bf16.msra.mxu0 %v629_v12  ;;  %v622_v22 = vld [vmem:[#allocation8 + $0x48] ss:$16 sps:$4 sm:$0xff]   ;;  %v627_v23 = vld [vmem:[#allocation8 + $0x6c] ss:$16 sps:$4 sm:$0xff]   ;;  %v632_v25 = vld [vmem:[#allocation9 + $0x50] sm:$0xff]   ;;  %v129_v44 = vsub.s32 2, %v120_v42 }
  0x52   :  { %569 = vmatprep.subr.bf16.mxu0 %v630_v13  ;;  %v625_v24 = vld [vmem:[#allocation8 + $0x68] ss:$16 sps:$4 sm:$0xff]   ;;  %v633_v26 = vld [vmem:[#allocation9 + $0x10] sm:$0xff]   ;;  %v636_v29 = vld [vmem:[#allocation9 + $0x60] sm:$0xff]   ;;  %v125_v46 = vsub.s32 1, %v120_v42  ;;  %v133_v47 = vsub.s32 3, %v120_v42 }
  0x53   :  { %v634_v27 = vld [vmem:[#allocation9 + $0x58] sm:$0xff]   ;;  %v637_v30 = vld [vmem:[#allocation9 + $0x20] sm:$0xff]   ;;  %v638_v31 = vld [vmem:[#allocation9 + $0x68] sm:$0xff]   ;;  %v488_v6 = vand.u32 127, %v119_v38 }
  0x54   :  { %227 = vmatpush1.bf16.msra.mxu1 %v611_v7  ;;  %v635_v28 = vld [vmem:[#allocation9 + $0x18] sm:$0xff]   ;;  %v639_v32 = vld [vmem:[#allocation9 + $0x28] sm:$0xff]   ;;  %v640_v33 = vld [vmem:[#allocation9 + $0x70] sm:$0xff]  }
  0x55   :  { %228 = vmatprep.subr.bf16.mxu1 %v612_v8  ;;  %570 = vmatpush3.bf16.msra.mxu0 %v631_v14  ;;  %v641_v34 = vld [vmem:[#allocation9 + $0x30] sm:$0xff]   ;;  %v642_v35 = vld [vmem:[#allocation9 + $0x78] sm:$0xff]   ;;  %vm489_vm2 = vcmp.lt.s32.totalorder %v488_v6, 8 }
  0x56   :  { %571 = vmatprep.subr.bf16.mxu0 %v632_v25  ;;  %v643_v36 = vld [vmem:[#allocation9 + $0x38] sm:$0xff]   ;;  %v117_v45 = vld [vmem:[%s905_s3] sm:$0xf] }
  0x57   :  { %v122_v48 = vrot.slane %v117_v45, %v121_v43  ;;  %v130_v49 = vrot.slane %v117_v45, %v129_v44  ;;  %v126_v50 = vrot.slane %v117_v45, %v125_v46  ;;  %v134_v51 = vrot.slane %v117_v45, %v133_v47 }
  0x58   :  { %229 = vmatpush1.bf16.msra.mxu1 %v614_v9  ;;  %v484_v9 = vstv %s907_s5  ;;  %s780_s5 = smov [#allocation11]  }
  0x59   :  { %265 = vmatprep.subr.bf16.mxu1 %v618_v10  ;;  %572 = vmatpush3.bf16.msra.mxu0 %v633_v26  ;;  %s517_s25 = sshll.u32 %s780_s5, 4  ;;  %s518_s25 = int_to_ptr.vmem [resolvable:$true] %s517_s25 }
  0x5a   :  { %573 = vmatprep.subr.bf16.mxu0 %v634_v27  ;;  %s740_s26 = scalar_lea.vmem %s518_s25, 256  ;;  %p745_p5 = scmp.lt.s32.totalorder %s518_s25, %s518_s25 }
  0x5b   :  { %p741_p4 = scmp.ne.s32.totalorder %s518_s25, %s740_s26  ;;  %p746_p6 = scmp.lt.s32.totalorder %s740_s26, %s740_s26 }
  0x5d   :  { %574 = vmatpush3.bf16.msra.mxu0 %v635_v28  ;;  %p747_p7 = por %p746_p6, %p745_p5 }
  0x5e   :  { %575 = vmatprep.subr.bf16.mxu0 %v636_v29 }
  0x5f   :  { %p748_p8 = pnand %p747_p7, %p741_p4 }
  0x61   :  { %576 = vmatpush3.bf16.msra.mxu0 %v637_v30 }
  0x62   :  { %577 = vmatprep.subr.bf16.mxu0 %v638_v31 }
  0x65   :  { %578 = vmatpush3.bf16.msra.mxu0 %v639_v32 }
  0x66   :  { %579 = vmatprep.subr.bf16.mxu0 %v640_v33 }
  0x69   :  { %580 = vmatpush3.bf16.msra.mxu0 %v641_v34 }
  0x6a   :  { %581 = vmatprep.subr.bf16.mxu0 %v642_v35 }
  0x6d   :  { %582 = vmatpush3.bf16.msra.mxu0 %v643_v36 }
  0xbe   :  { %v96_v17 = vpop.permute.xlu0 %95 }
  0xbf   :  { %v100_v19 = vsel %vm97_vm0, %v615_v15, %v96_v17 }
  0xc0   :  { %549 = vmatmul.mubr.msk.bf16.vlgmr.msra.gmra.mrb[0].mxu1 %vm219_vm1, %v100_v19 }
  0xc1   :  { %266 = vmatpush1.bf16.msra.mxu1 %v616_v16  ;;  %297 = vmatprep.mubr.bf16.mxu1 %v778_v0 }
  0xc2   :  { %267 = vmatprep.subr.bf16.mxu1 %v621_v18 }
  0xc5   :  { %268 = vmatpush1.bf16.msra.mxu1 %v619_v20 }
  0xc6   :  { %269 = vmatprep.subr.bf16.mxu1 %v624_v21 }
  0xc9   :  { %270 = vmatpush1.bf16.msra.mxu1 %v622_v22 }
  0xca   :  { %271 = vmatprep.subr.bf16.mxu1 %v627_v23 }
  0xcd   :  { %272 = vmatpush1.bf16.msra.mxu1 %v625_v24 }
  0xd0   :  { %550 = vmatmul.mubr.msk.bf16.vlgmr.msra.gmra.mrb[4].mxu1 %vm219_vm1, %v100_v19 }
 0x193   :  { %v256_v37 = vpop.f32.mrb[0].mxu1 }
 0x194   :  { %v258_v39 = vpop.f32.mrb[1].mxu1  ;;  %v257_v53 = vadd.f32 %v256_v37, %v122_v48 }
 0x195   :  { %v260_v40 = vpop.f32.mrb[2].mxu1  ;;  %v259_v56 = vadd.f32 %v258_v39, %v126_v50 }
 0x196   :  { %v262_v41 = vpop.f32.mrb[3].mxu1  ;;  %v261_v59 = vadd.f32 %v260_v40, %v122_v48 }
 0x197   :  { %v263_v63 = vadd.f32 %v262_v41, %v126_v50 }
 0x1a3   :  { %v299_v52 = vpop.f32.mrb[4].mxu1 }
 0x1a4   :  { %v300_v54 = vadd.f32 %v299_v52, %v130_v49  ;;  %v301_v55 = vpop.f32.mrb[5].mxu1 }
 0x1a5   :  { %v302_v57 = vadd.f32 %v301_v55, %v134_v51  ;;  %v303_v58 = vpop.f32.mrb[6].mxu1 }
 0x1a6   :  { %v308_v60 = vmul.f32 %v300_v54, %v257_v53  ;;  %v304_v61 = vadd.f32 %v303_v58, %v130_v49  ;;  %v305_v62 = vpop.f32.mrb[7].mxu1 }
 0x1a7   :  { %v306_v0 = vadd.f32 %v305_v62, %v134_v51  ;;  %v309_v1 = vmul.f32 %v302_v57, %v259_v56 }
 0x1a8   :  { %v310_v2 = vmul.f32 %v304_v61, %v261_v59 }
 0x1a9   :  { %v311_v3 = vmul.f32 %v306_v0, %v263_v63 }
 0x1aa   :  { %v312_v4 = vpack.c.bf16 %v310_v2, %v308_v60 }
 0x1ab   :  { %v313_v5 = vpack.c.bf16 %v311_v3, %v309_v1 }
 0x1ad   :  { %474 = vmatprep.mubr.bf16.mxu0 %v313_v5 }
 0x1ae   :  { %475 = vmatmul.mubr.bf16.vlgmr.msra.gmra.mrb[0].mxu0 %v312_v4 }
 0x281   :  { %v583_v7 = vpop.f32.mrb[0].mxu0 }
 0x282   :  { %v584_v8 = vpop.f32.mrb[1].mxu0 }
 0x283   :  { %v585_v10 = vadd.f32 %v584_v8, %v583_v7  ;;  %v586_v11 = vpop.f32.mrb[2].mxu0 }
 0x284   :  { %v587_v12 = vpop.f32.mrb[3].mxu0 }
 0x285   :  { %v588_v13 = vadd.f32 %v587_v12, %v586_v11  ;;  %v485_v14 = vmul.f32 %v585_v10, %v484_v9 }
 0x287   :  { %v490_v15 = vsel %vm489_vm2, %v485_v14, -1e+30  ;;  %v486_v16 = vmul.f32 %v588_v13, %v484_v9 }
 0x288   :  { %492 = vmax.xlane.f32.xlu0 %v490_v15 }
 0x289   :  { %v491_v17 = vsel %vm489_vm2, %v486_v16, -1e+30 }
 0x28a   :  { %494 = vmax.xlane.f32.xlu1 %v491_v17 }
 0x315   :  { %v493_v18 = vpop.xlane.xlu0 %492 }
 0x316   :  { %v496_v19 = vsub.f32 %v490_v15, %v493_v18 }
 0x317   :  { %v495_v20 = vpop.xlane.xlu1 %494 }
 0x318   :  { %v498_v21 = vmul.f32 1.442695, %v496_v19  ;;  %v497_v22 = vsub.f32 %v491_v17, %v495_v20 }
 0x31a   :  { %644 = vpow2.f32 %v498_v21  ;;  %v500_v23 = vmul.f32 1.442695, %v497_v22 }
 0x31c   :  { %646 = vpow2.f32 %v500_v23 }
 0x324   :  { %v645_v24 = vpop.eup %644 }
 0x325   :  { %502 = vadd.xlane.f32.xlu1 %v645_v24 }
 0x326   :  { %v647_v25 = vpop.eup %646 }
 0x329   :  { %504 = vadd.xlane.f32.xlu1 %v647_v25 }
 0x3b2   :  { %v503_v26 = vpop.xlane.xlu1 %502 }
 0x3b3   :  { %648 = vrcp.f32 %v503_v26 }
 0x3b6   :  { %v505_v27 = vpop.xlane.xlu1 %504 }
 0x3b7   :  { %650 = vrcp.f32 %v505_v27 }
 0x3bd   :  { %v649_v28 = vpop.eup %648 }
 0x3be   :  { %v508_v29 = vmul.f32 %v649_v28, %v645_v24 }
 0x3c0   :  { %510 = vst [vmem:[#allocation11] sm:$0xff] %v508_v29 }
 0x3c1   :  { %v651_v30 = vpop.eup %650 }
 0x3c2   :  { %v509_v31 = vmul.f32 %v651_v30, %v647_v25 }
 0x3c4   :  { %511 = vst [vmem:[#allocation11 + $0x8] sm:$0xff] %v509_v31 }
 0x3c5   :  { %751 = shalt.err (!%p748_p8)
}
 0x3c6   :  { %s752_s29 = scalar_lea.hbm %s908_s6, 256 }
 0x3c7   :  { %p753_p9 = scmp.ne.s32.totalorder %s908_s6, %s752_s29  ;;  %p756_p10 = scmp.lt.u32.totalorder %s752_s29, %s908_s6 }
 0x3c9   :  { %p758_p11 = pnand %p756_p10, %p753_p9 }
 0x3cb   :  { %761 = shalt.err (!%p758_p11)
}
 0x3cc   :  { %s781_s24 = smov 128   ;;  %s782_s11 = smov 8  }
 0x3cd   :  { %523 = dma.vmem_to_hbm [thread:$0]  %s518_s25, 256, %s908_s6, [#allocation5], %s781_s24, %s781_s24, %s782_s11  }
 0x3ce   :  { %768 = dma.done.wait [#allocation5], 256  }
 0x3cf   :  { %769 = vsyncadd [#allocation5], 4294967040 }
 0x3d0   :  { %527 = vsyncpa [#allocation4], 1 }
 0x3d1   :  { %528 = vsyncpa [#allocation7], 1 }
 0x3d2   :  { %529 = vsyncpa [#allocation10], 1 }
 0x3d3   :  { %530 = vsyncpa [#allocation5], 1 }

</bundles_post_ra>
